<compile_context>
chip_gen: v7x
topology: tpu7x:2x2x1
jax: 0.10.0
libtpu: 0.0.40
codegen_flags: <defaults>
</compile_context>

<pallas_src>
import jax
import jax.numpy as jnp
from jax.experimental import pallas as pl
from jax.experimental.pallas import tpu as pltpu


def _round_up(x: int, m: int) -> int:
    return ((x + m - 1) // m) * m


def _head_kernel(x_ref, w1s_ref, b1_ref, w2_ref, b2_ref, out_ref):
    # x_ref: (TB, H*W, C) bf16 feature tile, channels on the lane axis.
    # Global average pool: 1/(H*W) is folded into w1s, so a plain f32-accumulated
    # sum over the sublane (spatial) axis suffices.
    pooled = jnp.sum(x_ref[...], axis=-2, dtype=jnp.float32)   # (TB, C)

    # hidden = SiLU(pooled @ (W1/HW) + b1)             W1s: (C, 512), b1: (1, 512)
    h = jnp.dot(pooled, w1s_ref[...], preferred_element_type=jnp.float32)
    h = h + b1_ref[...]
    h = h * jax.nn.sigmoid(h)                          # SiLU

    # logits = h @ W2p + b2p                           W2p: (512, Kp), b2p: (1, Kp)
    logits = jnp.dot(h, w2_ref[...], preferred_element_type=jnp.float32)
    logits = logits + b2_ref[...]

    out_ref[...] = logits.astype(out_ref.dtype)        # lane-dense (TB, Kp) store


def _pick_batch_tile(B: int, HW: int, C: int, hidden: int, kp: int,
                     tb_max: int, vmem_budget_bytes: int) -> int:
    """Largest sublane-aligned batch tile whose double-buffered working set fits."""
    resident = (C * hidden + hidden + hidden * kp + kp) * 4      # f32 weights/biases
    tb = min(tb_max, _round_up(B, 8))
    tb = max(8, (tb // 8) * 8)
    while tb > 8:
        per_tile = 2 * (tb * HW * C * 2)                 # bf16 feats, double-buffered
        per_tile += 2 * (tb * kp * 4)                    # f32 output, double-buffered
        if per_tile + resident <= vmem_budget_bytes:
            break
        tb -= 8
    return tb


def cnn_classifier_head(feats_nchw, w1, b1, w2, b2, *, tb: int = 128):
    """feats_nchw: (B, C, H, W) encoder feature map. Returns (B, class_num) logits."""
    B, C, H, W = feats_nchw.shape
    HW = H * W
    hidden = w1.shape[1]
    class_num = w2.shape[1]

    # Channels onto the lane axis; bf16 halves HBM bytes of the dominant tensor.
    x = jnp.transpose(feats_nchw.reshape(B, C, HW), (0, 2, 1)).astype(jnp.bfloat16)

    # Pad classifier columns to a full 128-lane register for unmasked stores.
    kp = _round_up(max(class_num, 1), 128)

    # VMEM-aware batch tile (budget leaves headroom under the 64 MiB v7x limit).
    tb_eff = _pick_batch_tile(B, HW, C, hidden, kp, tb, 48 * 1024 * 1024)
    b_pad = _round_up(B, tb_eff)
    if b_pad != B:
        x = jnp.pad(x, ((0, b_pad - B), (0, 0), (0, 0)))

    # Fold pooling scale into W1 (absorbed by the MXU matmul).
    w1s = (w1 * (1.0 / HW)).astype(jnp.float32)
    b1_2d = b1.reshape(1, hidden).astype(jnp.float32)

    w2_p = jnp.zeros((hidden, kp), jnp.float32).at[:, :class_num].set(
        w2.astype(jnp.float32))
    b2_p = jnp.zeros((1, kp), jnp.float32).at[0, :class_num].set(
        b2.astype(jnp.float32))

    grid = (pl.cdiv(b_pad, tb_eff),)

    out = pl.pallas_call(
        _head_kernel,
        out_shape=jax.ShapeDtypeStruct((b_pad, kp), jnp.float32),
        grid=grid,
        in_specs=[
            # Feature map: tiled over batch, double-buffered by the pipeline.
            pl.BlockSpec((tb_eff, HW, C), lambda i: (i, 0, 0)),
            # Weights / biases: constant index -> stay VMEM-resident across steps.
            pl.BlockSpec((C, hidden), lambda i: (0, 0)),
            pl.BlockSpec((1, hidden), lambda i: (0, 0)),
            pl.BlockSpec((hidden, kp), lambda i: (0, 0)),
            pl.BlockSpec((1, kp), lambda i: (0, 0)),
        ],
        out_specs=pl.BlockSpec((tb_eff, kp), lambda i: (i, 0)),
        compiler_params=pltpu.CompilerParams(
            # Batch tiles are independent -> shard across TensorCores.
            dimension_semantics=("parallel",),
            vmem_limit_bytes=64 * 1024 * 1024,
        ),
    )(x, w1s, b1_2d, w2_p, b2_p)

    return out[:B, :class_num]


def _init_linear(key, fan_in, fan_out):
    # Mimic torch.nn.Linear default init: U(-1/sqrt(fan_in), 1/sqrt(fan_in))
    kw, kb = jax.random.split(key)
    bound = 1.0 / jnp.sqrt(jnp.float32(fan_in))
    w = jax.random.uniform(kw, (fan_in, fan_out), jnp.float32, -bound, bound)
    b = jax.random.uniform(kb, (fan_out,), jnp.float32, -bound, bound)
    return w, b


if __name__ == "__main__":
    key = jax.random.PRNGKey(0)
    k_feat, k_h, k_c = jax.random.split(key, 3)

    # Small, self-consistent shapes:
    #   B=2 images, encoder feature map C=128 channels at 8x8 spatial
    #   (stand-in for EfficientNet-b0's 1280-channel output), hidden=512,
    #   class_num=2 (module default).
    B, C_FEAT, H, W = 2, 128, 8, 8
    HIDDEN, CLASS_NUM = 512, 2

    feats = jax.random.normal(k_feat, (B, C_FEAT, H, W), jnp.float32)
    w1, b1 = _init_linear(k_h, C_FEAT, HIDDEN)
    w2, b2 = _init_linear(k_c, HIDDEN, CLASS_NUM)

    logits = cnn_classifier_head(feats, w1, b1, w2, b2)
    logits = jax.block_until_ready(logits)

    # Pure-JAX reference of the same head math, matching the bf16 feature-map
    # input the kernel consumes (accumulations in f32 on both sides).
    feats_q = feats.astype(jnp.bfloat16).astype(jnp.float32)
    pooled_ref = jnp.mean(feats_q.reshape(B, C_FEAT, -1), axis=-1)
    h_ref = pooled_ref @ w1 + b1
    h_ref = h_ref * jax.nn.sigmoid(h_ref)
    logits_ref = h_ref @ w2 + b2

    assert logits.shape == (B, CLASS_NUM)
    assert jnp.allclose(logits, logits_ref, atol=5e-3, rtol=5e-3), (
        jnp.max(jnp.abs(logits - logits_ref)))

    print("KERNEL_OK")
</pallas_src>

<mosaic_0001>
module attributes {stable_mosaic.version = 11 : i64} {
  func.func @_head_kernel(%arg0: i32, %arg1: memref<8x64x128xbf16, #tpu.memory_space<vmem>>, %arg2: memref<128x512xf32, #tpu.memory_space<vmem>>, %arg3: memref<1x512xf32, #tpu.memory_space<vmem>>, %arg4: memref<512x128xf32, #tpu.memory_space<vmem>>, %arg5: memref<1x128xf32, #tpu.memory_space<vmem>>, %arg6: memref<8x128xf32, #tpu.memory_space<vmem>>) attributes {dimension_semantics = [#tpu.dimension_semantics<parallel>], iteration_bounds = array<i64: 1>, scalar_prefetch = 0 : i64, scratch_operands = 0 : i64, tpu.core_type = #tpu.core_type<tc>, window_params = [{transform_indices = @transform_0, window_bounds = array<i64: 8, 64, 128>}, {pipeline_mode = #tpu.pipeline_mode<synchronous>, transform_indices = @transform_1, window_bounds = array<i64: 128, 512>}, {pipeline_mode = #tpu.pipeline_mode<synchronous>, transform_indices = @transform_2, window_bounds = array<i64: 1, 512>}, {pipeline_mode = #tpu.pipeline_mode<synchronous>, transform_indices = @transform_3, window_bounds = array<i64: 512, 128>}, {pipeline_mode = #tpu.pipeline_mode<synchronous>, transform_indices = @transform_4, window_bounds = array<i64: 1, 128>}, {transform_indices = @transform_5, window_bounds = array<i64: 8, 128>}]} {
    %c0 = arith.constant 0 : index
    %c0_0 = arith.constant 0 : index
    %c0_1 = arith.constant 0 : index
    %0 = vector.load %arg1[%c0, %c0_0, %c0_1] : memref<8x64x128xbf16, #tpu.memory_space<vmem>>, vector<8x64x128xbf16>
    %1 = arith.extf %0 : vector<8x64x128xbf16> to vector<8x64x128xf32>
    %cst = arith.constant dense<0.000000e+00> : vector<8x128xf32>
    %2 = vector.multi_reduction <add>, %1, %cst [1] : vector<8x64x128xf32> to vector<8x128xf32>
    %c0_2 = arith.constant 0 : index
    %c0_3 = arith.constant 0 : index
    %3 = vector.load %arg2[%c0_2, %c0_3] : memref<128x512xf32, #tpu.memory_space<vmem>>, vector<128x512xf32>
    %cst_4 = arith.constant dense<0.000000e+00> : vector<8x512xf32>
    %4 = tpu.matmul %2, %3, %cst_4 {dimension_numbers = #tpu.dot_dimension_numbers<[1], [0], [0], [1], [0, 0, 1, 1], [], []>} : vector<8x128xf32>, vector<128x512xf32>, vector<8x512xf32> -> vector<8x512xf32>
    %c0_5 = arith.constant 0 : index
    %c0_6 = arith.constant 0 : index
    %5 = vector.load %arg3[%c0_5, %c0_6] : memref<1x512xf32, #tpu.memory_space<vmem>>, vector<1x512xf32>
    %6 = vector.broadcast %5 : vector<1x512xf32> to vector<8x512xf32>
    %7 = arith.addf %4, %6 : vector<8x512xf32>
    %8 = arith.negf %7 : vector<8x512xf32>
    %9 = math.exp %8 : vector<8x512xf32>
    %cst_7 = arith.constant 1.000000e+00 : f32
    %10 = vector.broadcast %cst_7 : f32 to vector<8x512xf32>
    %11 = arith.addf %10, %9 : vector<8x512xf32>
    %12 = arith.divf %10, %11 : vector<8x512xf32>
    %13 = arith.mulf %7, %12 : vector<8x512xf32>
    %c0_8 = arith.constant 0 : index
    %c0_9 = arith.constant 0 : index
    %14 = vector.load %arg4[%c0_8, %c0_9] : memref<512x128xf32, #tpu.memory_space<vmem>>, vector<512x128xf32>
    %cst_10 = arith.constant dense<0.000000e+00> : vector<8x128xf32>
    %15 = tpu.matmul %13, %14, %cst_10 {dimension_numbers = #tpu.dot_dimension_numbers<[1], [0], [0], [1], [0, 0, 1, 1], [], []>} : vector<8x512xf32>, vector<512x128xf32>, vector<8x128xf32> -> vector<8x128xf32>
    %c0_11 = arith.constant 0 : index
    %c0_12 = arith.constant 0 : index
    %16 = vector.load %arg5[%c0_11, %c0_12] : memref<1x128xf32, #tpu.memory_space<vmem>>, vector<1x128xf32>
    %17 = vector.broadcast %16 : vector<1x128xf32> to vector<8x128xf32>
    %18 = arith.addf %15, %17 : vector<8x128xf32>
    %c0_13 = arith.constant 0 : index
    %c0_14 = arith.constant 0 : index
    %19 = vector.load %arg6[%c0_13, %c0_14] : memref<8x128xf32, #tpu.memory_space<vmem>>, vector<8x128xf32>
    tpu.vector_store %arg6[%c0_13, %c0_14], %18 {strides = array<i32>} : memref<8x128xf32, #tpu.memory_space<vmem>>, vector<8x128xf32>,
    return
  }
  func.func @transform_0(%arg0: i32) -> (i32, i32, i32) {
    %c0_i32 = arith.constant 0 : i32
    %c0_i32_0 = arith.constant 0 : i32
    %c0_i32_1 = arith.constant 0 : i32
    return %arg0, %c0_i32, %c0_i32_0 : i32, i32, i32
  }
  func.func @transform_1(%arg0: i32) -> (i32, i32) {
    %c0_i32 = arith.constant 0 : i32
    %c0_i32_0 = arith.constant 0 : i32
    %c0_i32_1 = arith.constant 0 : i32
    return %c0_i32, %c0_i32_0 : i32, i32
  }
  func.func @transform_2(%arg0: i32) -> (i32, i32) {
    %c0_i32 = arith.constant 0 : i32
    %c0_i32_0 = arith.constant 0 : i32
    %c0_i32_1 = arith.constant 0 : i32
    return %c0_i32, %c0_i32_0 : i32, i32
  }
  func.func @transform_3(%arg0: i32) -> (i32, i32) {
    %c0_i32 = arith.constant 0 : i32
    %c0_i32_0 = arith.constant 0 : i32
    %c0_i32_1 = arith.constant 0 : i32
    return %c0_i32, %c0_i32_0 : i32, i32
  }
  func.func @transform_4(%arg0: i32) -> (i32, i32) {
    %c0_i32 = arith.constant 0 : i32
    %c0_i32_0 = arith.constant 0 : i32
    %c0_i32_1 = arith.constant 0 : i32
    return %c0_i32, %c0_i32_0 : i32, i32
  }
  func.func @transform_5(%arg0: i32) -> (i32, i32) {
    %c0_i32 = arith.constant 0 : i32
    %c0_i32_0 = arith.constant 0 : i32
    return %arg0, %c0_i32 : i32, i32
  }
}

</mosaic_0001>

<bundles_post_ra>
// kernel: tpu_custom_call.1
= control target key start
LH: loop header
LB: loop body
LE: loop exit
PB: predicated region body
PF: predicated region fallthrough
CT: control target
= control target key end

     0   :  { %10 = vsyncpa [#allocation3], 0  ;;  %s1705_s0 = inlined_call_operand.hbm [shape: bf16[8,64,128], index: 0, kind: input, shape index: {}]   ;;  %s1706_s1 = inlined_call_operand.hbm [shape: f32[128,512], index: 1, kind: input, shape index: {}]   ;;  %s1707_s2 = inlined_call_operand.hbm [shape: f32[1,512], index: 2, kind: input, shape index: {}]   ;;  %s1708_s3 = inlined_call_operand.hbm [shape: f32[512,128], index: 3, kind: input, shape index: {}]   ;;  %s1709_s4 = inlined_call_operand.hbm [shape: f32[1,128], index: 4, kind: input, shape index: {}]   ;;  %s1710_s5 = inlined_call_operand.hbm [shape: f32[8,128], index: 5, kind: output, shape index: {}]  }
   0x1   :  { %11 = vsyncpa [#allocation6], 0 }
   0x2   :  { %12 = vsyncpa [#allocation9], 0 }
   0x3   :  { %13 = vsyncpa [#allocation4], 0  ;;  %s1356_s18 = smov [#allocation5]   ;;  %s1216_s22 = scalar_lea.hbm %s1706_s1, 8192 }
   0x4   :  { %s31_s19 = sshll.u32 %s1356_s18, 4  ;;  %p1217_p0 = scmp.ne.s32.totalorder %s1706_s1, %s1216_s22  ;;  %s32_s19 = int_to_ptr.vmem [resolvable:$true] %s31_s19 }
   0x5   :  { %p1220_p1 = scmp.lt.u32.totalorder %s1216_s22, %s1706_s1 }
   0x7   :  { %p1222_p2 = pnand %p1220_p1, %p1217_p0 }
   0x9   :  { %1225 = shalt.err (!%p1222_p2)
}
   0xa   :  { %s1226_s27 = scalar_lea.vmem %s32_s19, 8192  ;;  %p1231_p4 = scmp.lt.s32.totalorder %s32_s19, %s32_s19 }
   0xb   :  { %p1227_p3 = scmp.ne.s32.totalorder %s32_s19, %s1226_s27  ;;  %p1232_p5 = scmp.lt.s32.totalorder %s1226_s27, %s1226_s27 }
   0xd   :  { %p1233_p6 = por %p1232_p5, %p1231_p4 }
   0xf   :  { %p1234_p7 = pnand %p1233_p6, %p1227_p3 }
  0x11   :  { %1237 = shalt.err (!%p1234_p7)
}
  0x12   :  { %s1357_s28 = smov 512   ;;  %s1358_s29 = smov 32  }
  0x13   :  { %37 = dma.hbm_to_vmem [thread:$0]  %s1706_s1, 8192, %s32_s19, [#allocation6], %s1357_s28, %s1357_s28, %s1358_s29  }
  0x14   :  { %s1359_s7 = smov [#allocation8]   ;;  %s1238_s11 = scalar_lea.hbm %s1708_s3, 8192 }
  0x15   :  { %s53_s8 = sshll.u32 %s1359_s7, 4  ;;  %p1239_p8 = scmp.ne.s32.totalorder %s1708_s3, %s1238_s11  ;;  %s54_s8 = int_to_ptr.vmem [resolvable:$true] %s53_s8 }
  0x16   :  { %p1242_p9 = scmp.lt.u32.totalorder %s1238_s11, %s1708_s3 }
  0x18   :  { %p1244_p10 = pnand %p1242_p9, %p1239_p8 }
  0x1a   :  { %1247 = shalt.err (!%p1244_p10)
}
  0x1b   :  { %s1248_s16 = scalar_lea.vmem %s54_s8, 8192  ;;  %p1253_p12 = scmp.lt.s32.totalorder %s54_s8, %s54_s8 }
  0x1c   :  { %p1249_p11 = scmp.ne.s32.totalorder %s54_s8, %s1248_s16  ;;  %p1254_p13 = scmp.lt.s32.totalorder %s1248_s16, %s1248_s16 }
  0x1e   :  { %p1255_p0 = por %p1254_p13, %p1253_p12 }
  0x20   :  { %p1256_p1 = pnand %p1255_p0, %p1249_p11 }
  0x22   :  { %1259 = shalt.err (!%p1256_p1)
}
  0x23   :  { %s1360_s1 = smov 128   ;;  %s1361_s17 = smov 8  }
  0x24   :  { %59 = dma.hbm_to_vmem [thread:$0]  %s1708_s3, 8192, %s54_s8, [#allocation9], %s1360_s1, %s1360_s1, %s1361_s17  }
  0x25   :  { %s1362_s20 = smov [#allocation2]   ;;  %s1260_s24 = scalar_lea.hbm %s1705_s0, 4096 }
  0x26   :  { %s19_s21 = sshll.u32 %s1362_s20, 4  ;;  %p1261_p2 = scmp.ne.s32.totalorder %s1705_s0, %s1260_s24  ;;  %s20_s21 = int_to_ptr.vmem [resolvable:$true] %s19_s21 }
  0x27   :  { %p1264_p3 = scmp.lt.u32.totalorder %s1260_s24, %s1705_s0 }
  0x29   :  { %p1266_p4 = pnand %p1264_p3, %p1261_p2 }
  0x2b   :  { %1269 = shalt.err (!%p1266_p4)
}
  0x2c   :  { %s1270_s29 = scalar_lea.vmem %s20_s21, 4096  ;;  %p1275_p6 = scmp.lt.s32.totalorder %s20_s21, %s20_s21 }
  0x2d   :  { %p1271_p5 = scmp.ne.s32.totalorder %s20_s21, %s1270_s29  ;;  %p1276_p7 = scmp.lt.s32.totalorder %s1270_s29, %s1270_s29 }
  0x2f   :  { %p1277_p8 = por %p1276_p7, %p1275_p6 }
  0x31   :  { %p1278_p9 = pnand %p1277_p8, %p1271_p5 }
  0x33   :  { %1281 = shalt.err (!%p1278_p9)
}
  0x34   :  { %s1363_s3 = smov 64   ;;  %s1364_s30 = smov 4  }
  0x35   :  { %25 = dma.hbm_to_vmem [thread:$0]  %s1705_s0, 4096, %s20_s21, [#allocation3], %s1363_s3, %s1363_s3, %s1364_s30  }
  0x36   :  { %s1365_s8 = smov [#allocation7]   ;;  %s1366_s10 = smov [#allocation10]  }
  0x37   :  { %s44_s9 = sshll.u32 %s1365_s8, 4  ;;  %s66_s11 = sshll.u32 %s1366_s10, 4  ;;  %s45_s9 = int_to_ptr.vmem [resolvable:$true] %s44_s9  ;;  %s67_s11 = int_to_ptr.vmem [resolvable:$true] %s66_s11 }
  0x38   :  { %s1282_s14 = scalar_lea.hbm %s1707_s2, 64 }
  0x39   :  { %p1283_p10 = scmp.ne.s32.totalorder %s1707_s2, %s1282_s14  ;;  %p1286_p11 = scmp.lt.u32.totalorder %s1282_s14, %s1707_s2 }
  0x3b   :  { %p1288_p12 = pnand %p1286_p11, %p1283_p10 }
  0x3d   :  { %1291 = shalt.err (!%p1288_p12)
}
  0x3e   :  { %s1292_s0 = scalar_lea.vmem %s45_s9, 64  ;;  %p1297_p0 = scmp.lt.s32.totalorder %s45_s9, %s45_s9 }
  0x3f   :  { %p1293_p13 = scmp.ne.s32.totalorder %s45_s9, %s1292_s0  ;;  %p1298_p1 = scmp.lt.s32.totalorder %s1292_s0, %s1292_s0 }
  0x41   :  { %p1299_p2 = por %p1298_p1, %p1297_p0 }
  0x43   :  { %p1300_p3 = pnand %p1299_p2, %p1293_p13 }
  0x45   :  { %1303 = shalt.err (!%p1300_p3)
}
  0x46   :  { %47 = dma.hbm_to_vmem [thread:$0]  %s1707_s2, 64, %s45_s9, [#allocation6]  }
  0x47   :  { %s1304_s22 = scalar_lea.hbm %s1709_s4, 16 }
  0x48   :  { %p1305_p4 = scmp.ne.s32.totalorder %s1709_s4, %s1304_s22  ;;  %p1308_p5 = scmp.lt.u32.totalorder %s1304_s22, %s1709_s4 }
  0x4a   :  { %p1310_p6 = pnand %p1308_p5, %p1305_p4 }
  0x4c   :  { %1313 = shalt.err (!%p1310_p6)
}
  0x4d   :  { %s1314_s27 = scalar_lea.vmem %s67_s11, 16  ;;  %s1318_s28 = scalar_lea.vmem %s67_s11, 32 }
  0x4e   :  { %p1315_p7 = scmp.ne.s32.totalorder %s67_s11, %s1314_s27  ;;  %p1319_p8 = scmp.lt.s32.totalorder %s67_s11, %s67_s11 }
  0x4f   :  { %p1320_p9 = scmp.lt.s32.totalorder %s1318_s28, %s1314_s27 }
  0x51   :  { %p1321_p10 = por %p1320_p9, %p1319_p8 }
  0x53   :  { %p1322_p11 = pnand %p1321_p10, %p1315_p7 }
  0x55   :  { %1325 = shalt.err (!%p1322_p11)
}
  0x56   :  { %69 = dma.hbm_to_vmem [thread:$0]  %s1709_s4, 16, %s67_s11, [#allocation9]  }
  0x57   :  { %1348 = dma.done.wait [#allocation3], 4096  }
  0x58   :  { %1349 = vsyncadd [#allocation3], 4294963200 }
  0x59   :  { %1350 = dma.done.wait [#allocation6], 8256  }
  0x5a   :  { %1351 = vsyncadd [#allocation6], 4294959040 }
  0x5b   :  { %1352 = dma.done.wait [#allocation9], 8208  }
  0x5c   :  { %1353 = vsyncadd [#allocation9], 4294959088  ;;  %v1367_v0 = vmov 0.0   ;;  %v318_v1 = vld [vmem:[#allocation5 + $0x8] sm:$0xff]  ;;  %v320_v3 = vld [vmem:[#allocation5 + $0x18] sm:$0xff]  ;;  %vm411_vm0 = vcmask 1041409  }
  0x5d   :  { %490 = vmatprep.mubr.f32.mxu0 %v1367_v0  ;;  %561 = vmatprep.mubr.f32.mxu1 %v1367_v0  ;;  %v322_v2 = vld [vmem:[#allocation5 + $0x28] sm:$0xff]  ;;  %v324_v5 = vld [vmem:[#allocation5 + $0x38] sm:$0xff]  ;;  %v317_v6 = vld [vmem:[#allocation5] sm:$0xff]  ;;  %vm413_vm1 = vcmask 1042434   ;;  %vm415_vm2 = vcmask 1043459   ;;  %vm417_vm3 = vcmask 1044484  }
  0x5e   :  { %v1059_v4 = vpack.c.bf16 %v322_v2, %v318_v1  ;;  %v321_v7 = vld [vmem:[#allocation5 + $0x20] sm:$0xff]  ;;  %v1091_v8 = vpack.c.bf16 %v324_v5, %v320_v3  ;;  %v319_v10 = vld [vmem:[#allocation5 + $0x10] sm:$0xff]  ;;  %v326_v12 = vld [vmem:[#allocation5 + $0x48] sm:$0xff]  ;;  %vm419_vm4 = vcmask 1045509   ;;  %vm421_vm5 = vcmask 1046534   ;;  %s1368_s4 = smov [#allocation11]  }
  0x5f   :  { %v1061_v9 = vpack.c.bf16 %v321_v7, %v317_v6  ;;  %v323_v11 = vld [vmem:[#allocation5 + $0x30] sm:$0xff]  ;;  %v330_v14 = vld [vmem:[#allocation5 + $0x68] sm:$0xff]  ;;  %v328_v15 = vld [vmem:[#allocation5 + $0x58] sm:$0xff]  ;;  %vm423_vm6 = vcmask 1047559   ;;  %s814_s3 = sshll.u32 %s1368_s4, 4  ;;  %s815_s3 = int_to_ptr.vmem [resolvable:$true] %s814_s3 }
  0x60   :  { %1060 = vmatprep.subr.bf16.mxu0 %v1059_v4  ;;  %v1093_v13 = vpack.c.bf16 %v323_v11, %v319_v10  ;;  %v332_v16 = vld [vmem:[#allocation5 + $0x78] sm:$0xff]  ;;  %1092 = vmatprep.subr.bf16.mxu1 %v1091_v8  ;;  %v1063_v17 = vpack.c.bf16 %v330_v14, %v326_v12  ;;  %v325_v19 = vld [vmem:[#allocation5 + $0x40] sm:$0xff]  ;;  %v327_v21 = vld [vmem:[#allocation5 + $0x50] sm:$0xff]  ;;  %s1326_s30 = scalar_lea.vmem %s815_s3, 128  ;;  %p1331_p13 = scmp.lt.s32.totalorder %s815_s3, %s815_s3 }
  0x61   :  { %1062 = vmatpush1.bf16.msra.mxu0 %v1061_v9  ;;  %v1095_v18 = vpack.c.bf16 %v332_v16, %v328_v15  ;;  %v329_v20 = vld [vmem:[#allocation5 + $0x60] sm:$0xff]  ;;  %v331_v23 = vld [vmem:[#allocation5 + $0x70] sm:$0xff]  ;;  %v334_v24 = vld [vmem:[#allocation5 + $0x88] sm:$0xff]  ;;  %p1327_p12 = scmp.ne.s32.totalorder %s815_s3, %s1326_s30  ;;  %p1332_p0 = scmp.lt.s32.totalorder %s1326_s30, %s1326_s30 }
  0x62   :  { %1094 = vmatpush1.bf16.msra.mxu1 %v1093_v13  ;;  %v1065_v22 = vpack.c.bf16 %v329_v20, %v325_v19  ;;  %v338_v25 = vld [vmem:[#allocation5 + $0xa8] sm:$0xff]  ;;  %1064 = vmatprep.subr.bf16.mxu0 %v1063_v17  ;;  %v1097_v26 = vpack.c.bf16 %v331_v23, %v327_v21  ;;  %v336_v28 = vld [vmem:[#allocation5 + $0x98] sm:$0xff]  ;;  %v333_v30 = vld [vmem:[#allocation5 + $0x80] sm:$0xff] }
  0x63   :  { %1096 = vmatprep.subr.bf16.mxu1 %v1095_v18  ;;  %v1067_v27 = vpack.c.bf16 %v338_v25, %v334_v24  ;;  %v340_v29 = vld [vmem:[#allocation5 + $0xb8] sm:$0xff]  ;;  %v337_v32 = vld [vmem:[#allocation5 + $0xa0] sm:$0xff]  ;;  %v335_v33 = vld [vmem:[#allocation5 + $0x90] sm:$0xff]  ;;  %p1333_p1 = por %p1332_p0, %p1331_p13 }
  0x64   :  { %v1099_v31 = vpack.c.bf16 %v340_v29, %v336_v28  ;;  %v339_v34 = vld [vmem:[#allocation5 + $0xb0] sm:$0xff]  ;;  %v1069_v35 = vpack.c.bf16 %v337_v32, %v333_v30  ;;  %v342_v36 = vld [vmem:[#allocation5 + $0xc8] sm:$0xff]  ;;  %v344_v38 = vld [vmem:[#allocation5 + $0xd8] sm:$0xff] }
  0x65   :  { %1066 = vmatpush1.bf16.msra.mxu0 %v1065_v22  ;;  %v346_v37 = vld [vmem:[#allocation5 + $0xe8] sm:$0xff]  ;;  %v1101_v39 = vpack.c.bf16 %v339_v34, %v335_v33  ;;  %v348_v41 = vld [vmem:[#allocation5 + $0xf8] sm:$0xff]  ;;  %v341_v42 = vld [vmem:[#allocation5 + $0xc0] sm:$0xff]  ;;  %p1334_p2 = pnand %p1333_p1, %p1327_p12 }
  0x66   :  { %1098 = vmatpush1.bf16.msra.mxu1 %v1097_v26  ;;  %1068 = vmatprep.subr.bf16.mxu0 %v1067_v27  ;;  %v1071_v40 = vpack.c.bf16 %v346_v37, %v342_v36  ;;  %v345_v43 = vld [vmem:[#allocation5 + $0xe0] sm:$0xff]  ;;  %v1103_v44 = vpack.c.bf16 %v348_v41, %v344_v38  ;;  %v343_v45 = vld [vmem:[#allocation5 + $0xd0] sm:$0xff]  ;;  %v350_v47 = vld [vmem:[#allocation5 + $0x108] sm:$0xff] }
  0x67   :  { %1100 = vmatprep.subr.bf16.mxu1 %v1099_v31  ;;  %v347_v46 = vld [vmem:[#allocation5 + $0xf0] sm:$0xff]  ;;  %v354_v48 = vld [vmem:[#allocation5 + $0x128] sm:$0xff]  ;;  %v352_v49 = vld [vmem:[#allocation5 + $0x118] sm:$0xff]  ;;  %v1073_v51 = vpack.c.bf16 %v345_v43, %v341_v42 }
  0x68   :  { %v356_v50 = vld [vmem:[#allocation5 + $0x138] sm:$0xff]  ;;  %v349_v52 = vld [vmem:[#allocation5 + $0x100] sm:$0xff]  ;;  %v351_v54 = vld [vmem:[#allocation5 + $0x110] sm:$0xff]  ;;  %v1105_v55 = vpack.c.bf16 %v347_v46, %v343_v45  ;;  %v1075_v56 = vpack.c.bf16 %v354_v48, %v350_v47 }
  0x69   :  { %1070 = vmatpush1.bf16.msra.mxu0 %v1069_v35  ;;  %v353_v53 = vld [vmem:[#allocation5 + $0x120] sm:$0xff]  ;;  %v355_v57 = vld [vmem:[#allocation5 + $0x130] sm:$0xff]  ;;  %v358_v58 = vld [vmem:[#allocation5 + $0x148] sm:$0xff]  ;;  %v1107_v60 = vpack.c.bf16 %v356_v50, %v352_v49 }
  0x6a   :  { %1102 = vmatpush1.bf16.msra.mxu1 %v1101_v39  ;;  %1072 = vmatprep.subr.bf16.mxu0 %v1071_v40  ;;  %v362_v59 = vld [vmem:[#allocation5 + $0x168] sm:$0xff]  ;;  %v360_v61 = vld [vmem:[#allocation5 + $0x158] sm:$0xff]  ;;  %v357_v63 = vld [vmem:[#allocation5 + $0x140] sm:$0xff]  ;;  %v1077_v3 = vpack.c.bf16 %v353_v53, %v349_v52  ;;  %v1109_v7 = vpack.c.bf16 %v355_v57, %v351_v54 }
  0x6b   :  { %1104 = vmatprep.subr.bf16.mxu1 %v1103_v44  ;;  %v364_v62 = vld [vmem:[#allocation5 + $0x178] sm:$0xff]  ;;  %v361_v0 = vld [vmem:[#allocation5 + $0x160] sm:$0xff]  ;;  %v1459_v1 = vld [vmem:[#allocation5 + $0x150] sm:$0xff]  ;;  %v1079_v8 = vpack.c.bf16 %v362_v59, %v358_v58 }
  0x6c   :  { %v363_v2 = vld [vmem:[#allocation5 + $0x170] sm:$0xff]  ;;  %v366_v4 = vld [vmem:[#allocation5 + $0x188] sm:$0xff]  ;;  %v1461_v6 = vld [vmem:[#allocation5 + $0x198] sm:$0xff]  ;;  %v1111_v12 = vpack.c.bf16 %v364_v62, %v360_v61  ;;  %v1081_v16 = vpack.c.bf16 %v361_v0, %v357_v63 }
  0x6d   :  { %1074 = vmatpush1.bf16.msra.mxu0 %v1073_v51  ;;  %v370_v5 = vld [vmem:[#allocation5 + $0x1a8] sm:$0xff]  ;;  %v372_v9 = vld [vmem:[#allocation5 + $0x1b8] sm:$0xff]  ;;  %v1463_v10 = vld [vmem:[#allocation5 + $0x180] sm:$0xff]  ;;  %v1113_v17 = vpack.c.bf16 %v363_v2, %v1459_v1 }
  0x6e   :  { %1106 = vmatpush1.bf16.msra.mxu1 %v1105_v55  ;;  %1076 = vmatprep.subr.bf16.mxu0 %v1075_v56  ;;  %v1465_v11 = vld [vmem:[#allocation5 + $0x1a0] sm:$0xff]  ;;  %v1467_v13 = vld [vmem:[#allocation5 + $0x190] sm:$0xff]  ;;  %v1471_v15 = vld [vmem:[#allocation5 + $0x1c8] sm:$0xff]  ;;  %v1083_v21 = vpack.c.bf16 %v370_v5, %v366_v4  ;;  %v1115_v22 = vpack.c.bf16 %v372_v9, %v1461_v6 }
  0x6f   :  { %1108 = vmatprep.subr.bf16.mxu1 %v1107_v60  ;;  %v1469_v14 = vld [vmem:[#allocation5 + $0x1b0] sm:$0xff]  ;;  %v1474_v18 = vld [vmem:[#allocation5 + $0x1e8] sm:$0xff]  ;;  %v1476_v19 = vld [vmem:[#allocation5 + $0x1d8] sm:$0xff]  ;;  %v1085_v23 = vpack.c.bf16 %v1465_v11, %v1463_v10 }
  0x70   :  { %v1478_v20 = vld [vmem:[#allocation5 + $0x1f8] sm:$0xff]  ;;  %v1117_v24 = vpack.c.bf16 %v1469_v14, %v1467_v13  ;;  %v1485_v25 = vld [vmem:[#allocation5 + $0x1c0] sm:$0xff]  ;;  %v1489_v27 = vld [vmem:[#allocation5 + $0x1d0] sm:$0xff]  ;;  %v1087_v28 = vpack.c.bf16 %v1474_v18, %v1471_v15 }
  0x71   :  { %1078 = vmatpush1.bf16.msra.mxu0 %v1077_v3  ;;  %v1487_v26 = vld [vmem:[#allocation5 + $0x1e0] sm:$0xff]  ;;  %v1119_v29 = vpack.c.bf16 %v1478_v20, %v1476_v19  ;;  %v1497_v31 = vld [vmem:[#allocation5 + $0x1f0] sm:$0xff]  ;;  %v1501_v33 = vld [vmem:[#allocation2 + $0x8] sm:$0xff]  }
  0x72   :  { %1110 = vmatpush1.bf16.msra.mxu1 %v1109_v7  ;;  %1080 = vmatprep.subr.bf16.mxu0 %v1079_v8  ;;  %v1089_v30 = vpack.c.bf16 %v1487_v26, %v1485_v25  ;;  %v1499_v32 = vld [vmem:[#allocation2] sm:$0xff]   ;;  %v1121_v34 = vpack.c.bf16 %v1497_v31, %v1489_v27  ;;  %v836_v37 = vunpack.c.l.bf16 %v1501_v33  ;;  %v1508_v38 = vld [vmem:[#allocation2 + $0x10] sm:$0xff]   ;;  %v1510_v39 = vld [vmem:[#allocation2 + $0x18] sm:$0xff]  }
  0x73   :  { %1112 = vmatprep.subr.bf16.mxu1 %v1111_v12  ;;  %v832_v35 = vunpack.c.l.bf16 %v1499_v32  ;;  %v833_v36 = vunpack.c.h.bf16 %v1499_v32  ;;  %v1512_v40 = vld [vmem:[#allocation2 + $0x20] sm:$0xff]   ;;  %v1518_v45 = vld [vmem:[#allocation2 + $0x28] sm:$0xff]   ;;  %v1520_v46 = vld [vmem:[#allocation2 + $0x30] sm:$0xff]  }
  0x74   :  { %v1522_v47 = vld [vmem:[#allocation2 + $0x38] sm:$0xff]   ;;  %v848_v49 = vunpack.c.l.bf16 %v1512_v40  ;;  %v849_v50 = vunpack.c.h.bf16 %v1512_v40  ;;  %v852_v51 = vunpack.c.l.bf16 %v1518_v45  ;;  %v1528_v52 = vld [vmem:[#allocation2 + $0x40] sm:$0xff]   ;;  %v1530_v53 = vld [vmem:[#allocation2 + $0x48] sm:$0xff]  }
  0x75   :  { %1082 = vmatpush1.bf16.msra.mxu0 %v1081_v16  ;;  %v1532_v54 = vld [vmem:[#allocation2 + $0x50] sm:$0xff]   ;;  %v1538_v59 = vld [vmem:[#allocation2 + $0x58] sm:$0xff]   ;;  %v1540_v60 = vld [vmem:[#allocation2 + $0x60] sm:$0xff]   ;;  %v864_v63 = vunpack.c.l.bf16 %v1528_v52  ;;  %v865_v0 = vunpack.c.h.bf16 %v1528_v52  ;;  %v868_v1 = vunpack.c.l.bf16 %v1530_v53 }
  0x76   :  { %1114 = vmatpush1.bf16.msra.mxu1 %v1113_v17  ;;  %1084 = vmatprep.subr.bf16.mxu0 %v1083_v21  ;;  %v1542_v61 = vld [vmem:[#allocation2 + $0x68] sm:$0xff]   ;;  %v1548_v2 = vld [vmem:[#allocation2 + $0x70] sm:$0xff]   ;;  %v1550_v3 = vld [vmem:[#allocation2 + $0x78] sm:$0xff]   ;;  %v880_v11 = vunpack.c.l.bf16 %v1540_v60  ;;  %v881_v12 = vunpack.c.h.bf16 %v1540_v60 }
  0x77   :  { %1116 = vmatprep.subr.bf16.mxu1 %v1115_v22  ;;  %v1556_v8 = vld [vmem:[#allocation2 + $0x80] sm:$0xff]   ;;  %v1558_v9 = vld [vmem:[#allocation2 + $0x88] sm:$0xff]   ;;  %v884_v15 = vunpack.c.l.bf16 %v1542_v61  ;;  %v1564_v16 = vld [vmem:[#allocation2 + $0x90] sm:$0xff]  }
  0x78   :  { %v1566_v17 = vld [vmem:[#allocation2 + $0x98] sm:$0xff]   ;;  %v977_v60 = vld [vmem:[#allocation2 + $0xa0] sm:$0xff]   ;;  %v1575_v10 = vld [vmem:[#allocation2 + $0xa8] sm:$0xff]   ;;  %v896_v13 = vunpack.c.l.bf16 %v1556_v8  ;;  %v897_v14 = vunpack.c.h.bf16 %v1556_v8 }
  0x79   :  { %1086 = vmatpush1.bf16.msra.mxu0 %v1085_v23  ;;  %v1586_v48 = vld [vmem:[#allocation2 + $0xb8] sm:$0xff]   ;;  %v901_v23 = vunpack.c.h.bf16 %v1558_v9  ;;  %v981_v20 = vld [vmem:[#allocation2 + $0xc0] sm:$0xff]   ;;  %v912_v62 = vunpack.c.l.bf16 %v977_v60  ;;  %v913_v44 = vunpack.c.h.bf16 %v977_v60  ;;  %v916_v22 = vunpack.c.l.bf16 %v1575_v10  ;;  %v1597_v6 = vld [vmem:[#allocation2 + $0xd0] sm:$0xff]  }
  0x7a   :  { %1118 = vmatpush1.bf16.msra.mxu1 %v1117_v24  ;;  %1088 = vmatprep.subr.bf16.mxu0 %v1087_v28  ;;  %v900_v24 = vunpack.c.l.bf16 %v1558_v9  ;;  %v1584_v28 = vld [vmem:[#allocation2 + $0xb0] sm:$0xff]   ;;  %v1599_v9 = vld [vmem:[#allocation2 + $0xd8] sm:$0xff]   ;;  %v917_v19 = vunpack.c.h.bf16 %v1575_v10  ;;  %v986_v60 = vld [vmem:[#allocation2 + $0xe8] sm:$0xff]   ;;  %v928_v57 = vunpack.c.l.bf16 %v981_v20  ;;  %v929_v43 = vunpack.c.h.bf16 %v981_v20 }
  0x7b   :  { %1120 = vmatprep.subr.bf16.mxu1 %v1119_v29  ;;  %v982_v29 = vld [vmem:[#allocation2 + $0xc8] sm:$0xff]   ;;  %v920_v58 = vunpack.c.l.bf16 %v1584_v28  ;;  %v921_v25 = vunpack.c.h.bf16 %v1584_v28  ;;  %v987_v21 = vld [vmem:[#allocation2 + $0xf0] sm:$0xff]   ;;  %v1609_v5 = vld [vmem:[#allocation2 + $0xf8] sm:$0xff]   ;;  %v936_v31 = vunpack.c.l.bf16 %v1597_v6  ;;  %v940_v10 = vunpack.c.l.bf16 %v1599_v9 }
  0x7c   :  { %v932_v7 = vunpack.c.l.bf16 %v982_v29  ;;  %v933_v27 = vunpack.c.h.bf16 %v982_v29  ;;  %v948_v42 = vunpack.c.l.bf16 %v986_v60  ;;  %v949_v18 = vunpack.c.h.bf16 %v986_v60 }
  0x7d   :  { %1090 = vmatpush1.bf16.msra.mxu0 %v1089_v30  ;;  %v985_v30 = vld [vmem:[#allocation2 + $0xe0] sm:$0xff]   ;;  %v952_v8 = vunpack.c.l.bf16 %v987_v21  ;;  %v953_v4 = vunpack.c.h.bf16 %v987_v21  ;;  %v956_v20 = vunpack.c.l.bf16 %v1609_v5  ;;  %v957_v55 = vunpack.c.h.bf16 %v1609_v5 }
  0x7e   :  { %1122 = vmatpush1.bf16.msra.mxu1 %v1121_v34  ;;  %v937_v34 = vunpack.c.h.bf16 %v1597_v6  ;;  %v944_v26 = vunpack.c.l.bf16 %v985_v30  ;;  %v945_v56 = vunpack.c.h.bf16 %v985_v30  ;;  %v213_v29 = vadd.f32 %v833_v36, %v832_v35 }
  0x7f   :  { %v226_v6 = vadd.f32 %v849_v50, %v848_v49  ;;  %v239_v30 = vadd.f32 %v865_v0, %v864_v63  ;;  %v252_v21 = vadd.f32 %v881_v12, %v880_v11  ;;  %v265_v60 = vadd.f32 %v897_v14, %v896_v13 }
  0x80   :  { %v278_v28 = vadd.f32 %v913_v44, %v912_v62  ;;  %v291_v41 = vadd.f32 %v929_v43, %v928_v57  ;;  %v214_v5 = vadd.f32 %v836_v37, %v213_v29  ;;  %v304_v36 = vadd.f32 %v945_v56, %v944_v26 }
  0x81   :  { %v227_v32 = vadd.f32 %v852_v51, %v226_v6  ;;  %v240_v35 = vadd.f32 %v868_v1, %v239_v30  ;;  %v253_v40 = vadd.f32 %v884_v15, %v252_v21  ;;  %v266_v49 = vadd.f32 %v900_v24, %v265_v60 }
  0x82   :  { %v279_v50 = vadd.f32 %v916_v22, %v278_v28  ;;  %v292_v52 = vadd.f32 %v932_v7, %v291_v41  ;;  %v1711_v63 = vunpack.c.h.bf16 %v1501_v33  ;;  %v1712_v43 = vunpack.c.h.bf16 %v1518_v45 }
  0x83   :  { %v1713_v37 = vunpack.c.h.bf16 %v1530_v53  ;;  %v305_v51 = vadd.f32 %v948_v42, %v304_v36  ;;  %v1714_v0 = vunpack.c.h.bf16 %v1542_v61  ;;  %v267_v56 = vadd.f32 %v901_v23, %v266_v49 }
  0x84   :  { %v215_v44 = vadd.f32 %v1711_v63, %v214_v5  ;;  %v228_v57 = vadd.f32 %v1712_v43, %v227_v32  ;;  %v280_v11 = vadd.f32 %v917_v19, %v279_v50  ;;  %v293_v12 = vadd.f32 %v933_v27, %v292_v52 }
  0x85   :  { %v241_v62 = vadd.f32 %v1713_v37, %v240_v35  ;;  %v254_v1 = vadd.f32 %v1714_v0, %v253_v40  ;;  %v1715_v15 = vunpack.c.l.bf16 %v1508_v38  ;;  %v1716_v41 = vunpack.c.l.bf16 %v1520_v46 }
  0x86   :  { %v1717_v7 = vunpack.c.l.bf16 %v1532_v54  ;;  %v306_v13 = vadd.f32 %v949_v18, %v305_v51  ;;  %v1718_v53 = vunpack.c.l.bf16 %v1548_v2  ;;  %v1719_v42 = vunpack.c.l.bf16 %v1564_v16 }
  0x87   :  { %v216_v22 = vadd.f32 %v1715_v15, %v215_v44  ;;  %v229_v33 = vadd.f32 %v1716_v41, %v228_v57  ;;  %v281_v24 = vadd.f32 %v920_v58, %v280_v11  ;;  %v294_v23 = vadd.f32 %v936_v31, %v293_v12 }
  0x88   :  { %v242_v45 = vadd.f32 %v1717_v7, %v241_v62  ;;  %v255_v14 = vadd.f32 %v1718_v53, %v254_v1  ;;  %v268_v61 = vadd.f32 %v1719_v42, %v267_v56  ;;  %v1720_v19 = vunpack.c.h.bf16 %v1508_v38 }
  0x89   :  { %v1721_v27 = vunpack.c.h.bf16 %v1520_v46  ;;  %v1722_v29 = vunpack.c.h.bf16 %v1532_v54  ;;  %v307_v30 = vadd.f32 %v952_v8, %v306_v13  ;;  %v1723_v18 = vunpack.c.h.bf16 %v1548_v2 }
  0x8a   :  { %v217_v26 = vadd.f32 %v1720_v19, %v216_v22  ;;  %v1724_v60 = vunpack.c.h.bf16 %v1564_v16  ;;  %v282_v32 = vadd.f32 %v921_v25, %v281_v24  ;;  %v295_v35 = vadd.f32 %v937_v34, %v294_v23 }
  0x8b   :  { %v230_v28 = vadd.f32 %v1721_v27, %v229_v33  ;;  %v243_v6 = vadd.f32 %v1722_v29, %v242_v45  ;;  %v256_v21 = vadd.f32 %v1723_v18, %v255_v14  ;;  %v1725_v58 = vunpack.c.l.bf16 %v1510_v39 }
  0x8c   :  { %v269_v5 = vadd.f32 %v1724_v60, %v268_v61  ;;  %v1726_v38 = vunpack.c.l.bf16 %v1522_v47  ;;  %v1727_v46 = vunpack.c.l.bf16 %v1538_v59  ;;  %v308_v54 = vadd.f32 %v953_v4, %v307_v30 }
  0x8d   :  { %v218_v31 = vadd.f32 %v1725_v58, %v217_v26  ;;  %v1728_v8 = vunpack.c.l.bf16 %v1550_v3  ;;  %v1729_v2 = vunpack.c.l.bf16 %v1566_v17  ;;  %v1730_v16 = vunpack.c.l.bf16 %v1586_v48 }
  0x8e   :  { %v231_v36 = vadd.f32 %v1726_v38, %v230_v28  ;;  %v244_v40 = vadd.f32 %v1727_v46, %v243_v6  ;;  %v296_v34 = vadd.f32 %v940_v10, %v295_v35  ;;  %v1731_v52 = vunpack.c.h.bf16 %v1510_v39 }
  0x8f   :  { %v257_v49 = vadd.f32 %v1728_v8, %v256_v21  ;;  %v270_v50 = vadd.f32 %v1729_v2, %v269_v5  ;;  %v283_v25 = vadd.f32 %v1730_v16, %v282_v32  ;;  %v1732_v44 = vunpack.c.h.bf16 %v1522_v47 }
  0x90   :  { %v219_v63 = vadd.f32 %v1731_v52, %v218_v31  ;;  %v1733_v57 = vunpack.c.h.bf16 %v1538_v59  ;;  %v309_v4 = vadd.f32 %v956_v20, %v308_v54  ;;  %v1734_v62 = vunpack.c.h.bf16 %v1550_v3 }
  0x91   :  { %v232_v43 = vadd.f32 %v1732_v44, %v231_v36  ;;  %v1735_v0 = vunpack.c.h.bf16 %v1566_v17  ;;  %v1736_v56 = vunpack.c.h.bf16 %v1586_v48  ;;  %v1737_v10 = vunpack.c.h.bf16 %v1599_v9 }
  0x92   :  { %v245_v37 = vadd.f32 %v1733_v57, %v244_v40  ;;  %v258_v51 = vadd.f32 %v1734_v62, %v257_v49  ;;  %v220_v12 = vrot.slane %v219_v63, 4  ;;  %v310_v22 = vadd.f32 %v957_v55, %v309_v4  ;;  %v612_v62 = vld [vmem:[#allocation8 + $0x80] sm:$0xff] }
  0x93   :  { %v271_v1 = vadd.f32 %v1735_v0, %v270_v50  ;;  %v284_v11 = vadd.f32 %v1736_v56, %v283_v25  ;;  %v297_v39 = vadd.f32 %v1737_v10, %v296_v34  ;;  %v233_v15 = vrot.slane %v232_v43, 4  ;;  %v644_v0 = vld [vmem:[#allocation8 + $0x180] sm:$0xff]  ;;  %v645_v56 = vld [vmem:[#allocation8 + $0x188] sm:$0xff] }
  0x94   :  { %v246_v47 = vrot.slane %v245_v37, 4  ;;  %v259_v41 = vrot.slane %v258_v51, 4  ;;  %v221_v3 = vadd.f32 %v220_v12, %v219_v63  ;;  %v311_v17 = vrot.slane %v310_v22, 4  ;;  %v597_v10 = vld [vmem:[#allocation8 + $0x8] sm:$0xff] }
  0x95   :  { %v272_v59 = vrot.slane %v271_v1, 4  ;;  %v285_v33 = vrot.slane %v284_v11, 4  ;;  %v298_v20 = vrot.slane %v297_v39, 4  ;;  %v234_v7 = vadd.f32 %v233_v15, %v232_v43  ;;  %v628_v15 = vld [vmem:[#allocation8 + $0x100] sm:$0xff] }
  0x96   :  { %v247_v45 = vadd.f32 %v246_v47, %v245_v37  ;;  %v260_v13 = vadd.f32 %v259_v41, %v258_v51  ;;  %v222_v9 = vrot.slane %v221_v3, 2  ;;  %v312_v24 = vadd.f32 %v311_v17, %v310_v22  ;;  %v613_v51 = vld [vmem:[#allocation8 + $0x88] sm:$0xff]  ;;  %v614_v41 = vld [vmem:[#allocation8 + $0x90] sm:$0xff] }
  0x97   :  { %v273_v48 = vadd.f32 %v272_v59, %v271_v1  ;;  %v286_v53 = vadd.f32 %v285_v33, %v284_v11  ;;  %v299_v14 = vadd.f32 %v298_v20, %v297_v39  ;;  %v235_v42 = vrot.slane %v234_v7, 2  ;;  %v596_v11 = vld [vmem:[#allocation8] sm:$0xff]  ;;  %v629_v47 = vld [vmem:[#allocation8 + $0x108] sm:$0xff]  ;;  %v615_v59 = vld [vmem:[#allocation8 + $0x98] sm:$0xff] }
  0x98   :  { %v248_v61 = vrot.slane %v247_v45, 2  ;;  %v261_v23 = vrot.slane %v260_v13, 2  ;;  %v223_v27 = vadd.f32 %v222_v9, %v221_v3  ;;  %v313_v6 = vrot.slane %v312_v24, 2  ;;  %v646_v33 = vld [vmem:[#allocation8 + $0x190] sm:$0xff]  ;;  %v647_v3 = vld [vmem:[#allocation8 + $0x198] sm:$0xff]  ;;  %v616_v9 = vld [vmem:[#allocation8 + $0xa0] sm:$0xff] }
  0x99   :  { %v274_v55 = vrot.slane %v273_v48, 2  ;;  %v287_v19 = vrot.slane %v286_v53, 2  ;;  %v300_v26 = vrot.slane %v299_v14, 2  ;;  %v236_v28 = vadd.f32 %v235_v42, %v234_v7  ;;  %v598_v7 = vld [vmem:[#allocation8 + $0x10] sm:$0xff]  ;;  %v617_v42 = vld [vmem:[#allocation8 + $0xa8] sm:$0xff] }
  0x9a   :  { %v249_v29 = vadd.f32 %v248_v61, %v247_v45  ;;  %v262_v30 = vadd.f32 %v261_v23, %v260_v13  ;;  %v224_v5 = vrot.slane %v223_v27, 1  ;;  %v314_v58 = vadd.f32 %v313_v6, %v312_v24  ;;  %v599_v45 = vld [vmem:[#allocation8 + $0x18] sm:$0xff]  ;;  %v648_v61 = vld [vmem:[#allocation8 + $0x1a0] sm:$0xff]  ;;  %v649_v23 = vld [vmem:[#allocation8 + $0x1a8] sm:$0xff] }
  0x9b   :  { %v275_v18 = vadd.f32 %v274_v55, %v273_v48  ;;  %v288_v21 = vadd.f32 %v287_v19, %v286_v53  ;;  %v301_v60 = vadd.f32 %v300_v26, %v299_v14  ;;  %v237_v32 = vrot.slane %v236_v28, 1  ;;  %v630_v48 = vld [vmem:[#allocation8 + $0x110] sm:$0xff]  ;;  %v631_v53 = vld [vmem:[#allocation8 + $0x118] sm:$0xff]  ;;  %v600_v55 = vld [vmem:[#allocation8 + $0x20] sm:$0xff] }
  0x9c   :  { %v250_v35 = vrot.slane %v249_v29, 1  ;;  %v263_v31 = vrot.slane %v262_v30, 1  ;;  %v225_v40 = vadd.f32 %v224_v5, %v223_v27  ;;  %v315_v49 = vrot.slane %v314_v58, 1  ;;  %v601_v19 = vld [vmem:[#allocation8 + $0x28] sm:$0xff]  ;;  %v651_v5 = vld [vmem:[#allocation8 + $0x1b8] sm:$0xff] }
  0x9d   :  { %v276_v38 = vrot.slane %v275_v18, 1  ;;  %v289_v36 = vrot.slane %v288_v21, 1  ;;  %v302_v46 = vrot.slane %v301_v60, 1  ;;  %v238_v54 = vadd.f32 %v237_v32, %v236_v28  ;;  %v632_v28 = vld [vmem:[#allocation8 + $0x120] sm:$0xff]  ;;  %v602_v32 = vld [vmem:[#allocation8 + $0x30] sm:$0xff] }
  0x9e   :  { %v251_v8 = vadd.f32 %v250_v35, %v249_v29  ;;  %v264_v2 = vadd.f32 %v263_v31, %v262_v30  ;;  %v316_v63 = vadd.f32 %v315_v49, %v314_v58  ;;  %v1123_v1 = vpack.c.bf16 %v613_v51, %v612_v62  ;;  %v633_v29 = vld [vmem:[#allocation8 + $0x128] sm:$0xff]  ;;  %v618_v30 = vld [vmem:[#allocation8 + $0xb0] sm:$0xff]  ;;  %v603_v35 = vld [vmem:[#allocation8 + $0x38] sm:$0xff] }
  0x9f   :  { %v277_v50 = vadd.f32 %v276_v38, %v275_v18  ;;  %v290_v16 = vadd.f32 %v289_v36, %v288_v21  ;;  %v412_v25 = vsel %vm411_vm0, %v238_v54, %v225_v40  ;;  %v303_v34 = vadd.f32 %v302_v46, %v301_v60  ;;  %v619_v18 = vld [vmem:[#allocation8 + $0xb8] sm:$0xff]  ;;  %v650_v21 = vld [vmem:[#allocation8 + $0x1b0] sm:$0xff]  ;;  %v620_v40 = vld [vmem:[#allocation8 + $0xc0] sm:$0xff] }
  0xa0   :  { %v414_v52 = vsel %vm413_vm1, %v251_v8, %v412_v25  ;;  %v1155_v39 = vpack.c.bf16 %v645_v56, %v644_v0  ;;  %v1125_v12 = vpack.c.bf16 %v597_v10, %v596_v11  ;;  %1124 = vmatprep.subr.bf16.mxu0 %v1123_v1  ;;  %v1157_v22 = vpack.c.bf16 %v629_v47, %v628_v15  ;;  %v634_v38 = vld [vmem:[#allocation8 + $0x130] sm:$0xff]  ;;  %v635_v36 = vld [vmem:[#allocation8 + $0x138] sm:$0xff]  ;;  %v621_v54 = vld [vmem:[#allocation8 + $0xc8] sm:$0xff] }
  0xa1   :  { %v416_v44 = vsel %vm415_vm2, %v264_v2, %v414_v52  ;;  %v1127_v20 = vpack.c.bf16 %v615_v59, %v614_v41  ;;  %v1159_v17 = vpack.c.bf16 %v647_v3, %v646_v33  ;;  %v1129_v13 = vpack.c.bf16 %v599_v45, %v598_v7  ;;  %v652_v8 = vld [vmem:[#allocation8 + $0x1c0] sm:$0xff]  ;;  %v653_v2 = vld [vmem:[#allocation8 + $0x1c8] sm:$0xff]  ;;  %v655_v62 = vld [vmem:[#allocation8 + $0x1d8] sm:$0xff] }
  0xa2   :  { %v418_v43 = vsel %vm417_vm3, %v277_v50, %v416_v44  ;;  %1156 = vmatprep.subr.bf16.mxu1 %v1155_v39  ;;  %v1161_v14 = vpack.c.bf16 %v631_v53, %v630_v48  ;;  %v1131_v24 = vpack.c.bf16 %v617_v42, %v616_v9  ;;  %v1163_v26 = vpack.c.bf16 %v649_v23, %v648_v61  ;;  %v604_v50 = vld [vmem:[#allocation8 + $0x40] sm:$0xff]  ;;  %v606_v51 = vld [vmem:[#allocation8 + $0x50] sm:$0xff]  ;;  %v607_v0 = vld [vmem:[#allocation8 + $0x58] sm:$0xff] }
  0xa3   :  { %v420_v57 = vsel %vm419_vm4, %v290_v16, %v418_v43  ;;  %v1133_v27 = vpack.c.bf16 %v601_v19, %v600_v55  ;;  %v1165_v6 = vpack.c.bf16 %v633_v29, %v632_v28  ;;  %v1135_v60 = vpack.c.bf16 %v619_v18, %v618_v30  ;;  %v605_v16 = vld [vmem:[#allocation8 + $0x48] sm:$0xff]  ;;  %v636_v52 = vld [vmem:[#allocation8 + $0x140] sm:$0xff]  ;;  %v622_v43 = vld [vmem:[#allocation8 + $0xd0] sm:$0xff] }
  0xa4   :  { %v422_v37 = vsel %vm421_vm5, %v303_v34, %v420_v57  ;;  %v1167_v58 = vpack.c.bf16 %v651_v5, %v650_v21  ;;  %v1137_v31 = vpack.c.bf16 %v603_v35, %v602_v32  ;;  %v1169_v46 = vpack.c.bf16 %v635_v36, %v634_v38  ;;  %v623_v57 = vld [vmem:[#allocation8 + $0xd8] sm:$0xff]  ;;  %v638_v11 = vld [vmem:[#allocation8 + $0x150] sm:$0xff]  ;;  %v625_v15 = vld [vmem:[#allocation8 + $0xe8] sm:$0xff] }
  0xa5   :  { %v424_v4 = vsel %vm423_vm6, %v316_v63, %v422_v37  ;;  %v1139_v49 = vpack.c.bf16 %v621_v54, %v620_v40  ;;  %v1171_v25 = vpack.c.bf16 %v653_v2, %v652_v8  ;;  %v1141_v34 = vpack.c.bf16 %v605_v16, %v604_v50  ;;  %v637_v63 = vld [vmem:[#allocation8 + $0x148] sm:$0xff]  ;;  %v654_v37 = vld [vmem:[#allocation8 + $0x1d0] sm:$0xff]  ;;  %v639_v10 = vld [vmem:[#allocation8 + $0x158] sm:$0xff] }
  0xa6   :  { %491 = vmatmul.mubr.f32.vlgmr.msra.gmra.mrb[0].mxu0 %v424_v4  ;;  %562 = vmatmul.mubr.f32.vlgmr.msra.gmra.mrb[0].mxu1 %v424_v4  ;;  %v1173_v44 = vpack.c.bf16 %v637_v63, %v636_v52  ;;  %v1143_v4 = vpack.c.bf16 %v623_v57, %v622_v43  ;;  %v1175_v1 = vpack.c.bf16 %v655_v62, %v654_v37  ;;  %v656_v47 = vld [vmem:[#allocation8 + $0x1e0] sm:$0xff]  ;;  %v657_v41 = vld [vmem:[#allocation8 + $0x1e8] sm:$0xff]  ;;  %v627_v48 = vld [vmem:[#allocation8 + $0xf8] sm:$0xff] }
  0xa7   :  { %1126 = vmatpush3.bf16.msra.mxu0 %v1125_v12  ;;  %1158 = vmatpush3.bf16.msra.mxu1 %v1157_v22  ;;  %v1145_v56 = vpack.c.bf16 %v607_v0, %v606_v51  ;;  %v1177_v39 = vpack.c.bf16 %v639_v10, %v638_v11  ;;  %v624_v12 = vld [vmem:[#allocation8 + $0xe0] sm:$0xff]  ;;  %v609_v33 = vld [vmem:[#allocation8 + $0x68] sm:$0xff]  ;;  %v658_v53 = vld [vmem:[#allocation8 + $0x1f0] sm:$0xff] }
  0xa8   :  { %1128 = vmatprep.subr.bf16.mxu0 %v1127_v20  ;;  %1160 = vmatprep.subr.bf16.mxu1 %v1159_v17  ;;  %v1147_v22 = vpack.c.bf16 %v625_v15, %v624_v12  ;;  %v608_v59 = vld [vmem:[#allocation8 + $0x60] sm:$0xff]  ;;  %v1179_v20 = vpack.c.bf16 %v657_v41, %v656_v47  ;;  %v641_v45 = vld [vmem:[#allocation8 + $0x168] sm:$0xff]  ;;  %v659_v9 = vld [vmem:[#allocation8 + $0x1f8] sm:$0xff] }
  0xa9   :  { %v1149_v3 = vpack.c.bf16 %v609_v33, %v608_v59  ;;  %v640_v7 = vld [vmem:[#allocation8 + $0x160] sm:$0xff]  ;;  %v610_v42 = vld [vmem:[#allocation8 + $0x70] sm:$0xff]  ;;  %v611_v61 = vld [vmem:[#allocation8 + $0x78] sm:$0xff] }
  0xaa   :  { %v1181_v17 = vpack.c.bf16 %v641_v45, %v640_v7  ;;  %v1153_v23 = vpack.c.bf16 %v611_v61, %v610_v42  ;;  %v642_v55 = vld [vmem:[#allocation8 + $0x170] sm:$0xff]  ;;  %v643_v19 = vld [vmem:[#allocation8 + $0x178] sm:$0xff]  ;;  %v829_v15 = vld [vmem:[#allocation10] ss:$0 sm:$0xff] }
  0xab   :  { %1130 = vmatpush3.bf16.msra.mxu0 %v1129_v13  ;;  %1162 = vmatpush3.bf16.msra.mxu1 %v1161_v14  ;;  %v626_v13 = vld [vmem:[#allocation8 + $0xf0] sm:$0xff]  ;;  %v381_v30 = vld [vmem:[#allocation7] sm:$0xf] }
  0xac   :  { %1132 = vmatprep.subr.bf16.mxu0 %v1131_v24  ;;  %1164 = vmatprep.subr.bf16.mxu1 %v1163_v26  ;;  %v1151_v14 = vpack.c.bf16 %v627_v48, %v626_v13  ;;  %v1183_v24 = vpack.c.bf16 %v659_v9, %v658_v53  ;;  %v1185_v26 = vpack.c.bf16 %v643_v19, %v642_v55 }
  0xaf   :  { %1134 = vmatpush3.bf16.msra.mxu0 %v1133_v27  ;;  %1166 = vmatpush3.bf16.msra.mxu1 %v1165_v6  ;;  %v383_v27 = vlaneseq }
  0xb0   :  { %1136 = vmatprep.subr.bf16.mxu0 %v1135_v60  ;;  %1168 = vmatprep.subr.bf16.mxu1 %v1167_v58 }
  0xb1   :  { %v384_v28 = vshrl.u32 %v383_v27, 7 }
  0xb3   :  { %1138 = vmatpush3.bf16.msra.mxu0 %v1137_v31  ;;  %1170 = vmatpush3.bf16.msra.mxu1 %v1169_v46  ;;  %v385_v29 = vsub.s32 0, %v384_v28  ;;  %v393_v6 = vsub.s32 2, %v384_v28  ;;  %v389_v18 = vsub.s32 1, %v384_v28  ;;  %v397_v21 = vsub.s32 3, %v384_v28 }
  0xb4   :  { %1140 = vmatprep.subr.bf16.mxu0 %v1139_v49  ;;  %1172 = vmatprep.subr.bf16.mxu1 %v1171_v25 }
  0xb5   :  { %v386_v60 = vrot.slane %v381_v30, %v385_v29  ;;  %v394_v5 = vrot.slane %v381_v30, %v393_v6  ;;  %v390_v32 = vrot.slane %v381_v30, %v389_v18  ;;  %v398_v35 = vrot.slane %v381_v30, %v397_v21 }
  0xb7   :  { %1142 = vmatpush3.bf16.msra.mxu0 %v1141_v34  ;;  %1174 = vmatpush3.bf16.msra.mxu1 %v1173_v44 }
  0xb8   :  { %1144 = vmatprep.subr.bf16.mxu0 %v1143_v4  ;;  %1176 = vmatprep.subr.bf16.mxu1 %v1175_v1 }
  0xbb   :  { %1146 = vmatpush3.bf16.msra.mxu0 %v1145_v56  ;;  %1178 = vmatpush3.bf16.msra.mxu1 %v1177_v39 }
  0xbc   :  { %1148 = vmatprep.subr.bf16.mxu0 %v1147_v22  ;;  %1180 = vmatprep.subr.bf16.mxu1 %v1179_v20 }
  0xbf   :  { %1150 = vmatpush3.bf16.msra.mxu0 %v1149_v3  ;;  %1182 = vmatpush3.bf16.msra.mxu1 %v1181_v17 }
  0xc0   :  { %1152 = vmatprep.subr.bf16.mxu0 %v1151_v14  ;;  %1184 = vmatprep.subr.bf16.mxu1 %v1183_v24 }
  0xc3   :  { %1154 = vmatpush3.bf16.msra.mxu0 %v1153_v23  ;;  %1186 = vmatpush3.bf16.msra.mxu1 %v1185_v26 }
 0x179   :  { %v492_v58 = vpop.f32.mrb[0].mxu0  ;;  %v563_v31 = vpop.f32.mrb[0].mxu1 }
 0x17a   :  { %v493_v38 = vadd.f32 %v492_v58, %v386_v60  ;;  %v564_v36 = vadd.f32 %v563_v31, %v394_v5  ;;  %v494_v46 = vpop.f32.mrb[1].mxu0  ;;  %v565_v40 = vpop.f32.mrb[1].mxu1 }
 0x17b   :  { %v495_v54 = vadd.f32 %v494_v46, %v390_v32  ;;  %v566_v8 = vadd.f32 %v565_v40, %v398_v35 }
 0x17c   :  { %v825_v49 = vmul.f32 -1.442695, %v493_v38  ;;  %v827_v2 = vmul.f32 -1.442695, %v564_v36 }
 0x17d   :  { %v826_v50 = vmul.f32 -1.442695, %v495_v54  ;;  %v828_v16 = vmul.f32 -1.442695, %v566_v8 }
 0x17e   :  { %1200 = vpow2.f32 %v825_v49 }
 0x17f   :  { %1202 = vpow2.f32 %v827_v2 }
 0x180   :  { %1204 = vpow2.f32 %v826_v50 }
 0x181   :  { %1206 = vpow2.f32 %v828_v16 }
 0x188   :  { %v1201_v25 = vpop.eup %1200 }
 0x189   :  { %v1203_v34 = vpop.eup %1202  ;;  %v580_v52 = vadd.f32 1.0, %v1201_v25 }
 0x18a   :  { %v1205_v63 = vpop.eup %1204  ;;  %v582_v44 = vadd.f32 1.0, %v1203_v34 }
 0x18b   :  { %v1207_v43 = vpop.eup %1206  ;;  %1208 = vrcp.f32 %v580_v52  ;;  %v581_v57 = vadd.f32 1.0, %v1205_v63 }
 0x18c   :  { %1210 = vrcp.f32 %v582_v44  ;;  %v583_v37 = vadd.f32 1.0, %v1207_v43 }
 0x18d   :  { %1212 = vrcp.f32 %v581_v57 }
 0x18e   :  { %1214 = vrcp.f32 %v583_v37 }
 0x195   :  { %v1209_v4 = vpop.eup %1208 }
 0x196   :  { %v1211_v62 = vpop.eup %1210  ;;  %v592_v56 = vmul.f32 %v1209_v4, %v493_v38 }
 0x197   :  { %v1213_v51 = vpop.eup %1212  ;;  %v594_v10 = vmul.f32 %v1211_v62, %v564_v36 }
 0x198   :  { %v1215_v0 = vpop.eup %1214  ;;  %v593_v1 = vmul.f32 %v1213_v51, %v495_v54 }
 0x199   :  { %v595_v11 = vmul.f32 %v1215_v0, %v566_v8 }
 0x19a   :  { %731 = vmatprep.mubr.f32.mxu0 %v593_v1 }
 0x19b   :  { %801 = vmatprep.mubr.f32.mxu1 %v595_v11  ;;  %732 = vmatmul.mubr.f32.vlgmr.msra.gmra.mrb[2].mxu0 %v592_v56 }
 0x19c   :  { %802 = vmatmul.mubr.f32.vlgmr.msra.gmra.mrb[2].mxu1 %v594_v10 }
 0x26e   :  { %v1021_v39 = vpop.f32.mrb[2].mxu0 }
 0x26f   :  { %v1056_v12 = vpop.f32.mrb[2].mxu1  ;;  %v1022_v47 = vpop.f32.mrb[3].mxu0 }
 0x270   :  { %v1023_v22 = vadd.f32 %v1022_v47, %v1021_v39  ;;  %v1057_v41 = vpop.f32.mrb[3].mxu1 }
 0x271   :  { %v1058_v59 = vadd.f32 %v1057_v41, %v1056_v12 }
 0x272   :  { %v734_v33 = vadd.f32 %v1023_v22, %v829_v15 }
 0x274   :  { %v804_v20 = vadd.f32 %v1058_v59, %v734_v33 }
 0x276   :  { %807 = vst [vmem:[#allocation11] sm:$0xff] %v804_v20 }
 0x277   :  { %1337 = shalt.err (!%p1334_p2)
}
 0x278   :  { %s1338_s8 = scalar_lea.hbm %s1710_s5, 128 }
 0x279   :  { %p1339_p3 = scmp.ne.s32.totalorder %s1710_s5, %s1338_s8  ;;  %p1342_p4 = scmp.lt.u32.totalorder %s1338_s8, %s1710_s5 }
 0x27b   :  { %p1344_p5 = pnand %p1342_p4, %p1339_p3 }
 0x27d   :  { %1347 = shalt.err (!%p1344_p5)
}
 0x27e   :  { %817 = dma.vmem_to_hbm [thread:$0]  %s815_s3, 128, %s1710_s5, [#allocation4]  }
 0x27f   :  { %1354 = dma.done.wait [#allocation4], 128  }
 0x280   :  { %1355 = vsyncadd [#allocation4], 4294967168 }
 0x281   :  { %821 = vsyncpa [#allocation3], 1 }
 0x282   :  { %822 = vsyncpa [#allocation6], 1 }
 0x283   :  { %823 = vsyncpa [#allocation9], 1 }
 0x284   :  { %824 = vsyncpa [#allocation4], 1 }

</bundles_post_ra>
